<compile_context>
chip_gen: v6e
topology: v6e:2x2x1
jax: 0.10.0
libtpu: 0.0.40
codegen_flags: <defaults>
</compile_context>

<pallas_src>
import functools

import jax
import jax.numpy as jnp
from jax.experimental import pallas as pl
from jax.experimental.pallas import tpu as pltpu

INPUT_DIM = 6
HIDDEN_DIM = 6
OUTPUT_DIM = 6
N_LAYERS = 2  # fixed at 2 layers, matching SongRNN_1 default


def song_rnn_kernel(x_ref, wx0_ref, b0_ref, w0_ref, w1_ref, b1_ref,
                    wfc_ref, bfc_ref, out_ref, pre_ref, hs_ref, *, T, Bp, H):
    """Whole sequence in one invocation (the recurrence is serial).

    x_ref:   (T*Bp, I)   time-major, batch padded to Bp, flattened
    wx0_ref: (I, 2H)     [W_ih0^T | 0]
    b0_ref:  (1, 2H)     [b_ih0+b_hh0 | 0]
    w0_ref:  (2H, 2H)    [[W_hh0^T, 0], [0, 0]]
    w1_ref:  (2H, 2H)    [[0, W_ih1^T], [0, W_hh1^T]]
    b1_ref:  (1, 2H)     [0 | b_ih1+b_hh1]
    wfc_ref: (2H, O)     [0 ; W_fc^T]
    bfc_ref: (1, O)
    out_ref: (T*Bp, O)
    pre_ref: (T*Bp, 2H)  scratch: hoisted layer-0 input projection
    hs_ref:  (T*Bp, 2H)  scratch: per-step packed hidden states [h1 | h2]
    """
    H2 = 2 * H

    # (1) Bulk layer-0 input projection: one big MXU dot for the whole sequence
    #     (no serial dependence). Lanes [H, 2H) of pre are exactly zero.
    pre_ref[...] = (
        jnp.dot(x_ref[...], wx0_ref[...], preferred_element_type=jnp.float32)
        + b0_ref[...])

    # Hoist loop-invariant loads / broadcasts / masks out of the recurrence.
    w0 = w0_ref[...]
    w1 = w1_ref[...]
    b1 = jnp.broadcast_to(b1_ref[...], (Bp, H2))
    lane = jax.lax.broadcasted_iota(jnp.int32, (Bp, H2), 1)
    lo_mask = lane < H                       # lanes [0, H) hold layer-1 state h1

    def step(t, h12):
        # h12 = [h1_{t-1} | h2_{t-1}]  (lane-packed, (Bp, 2H))
        row = pl.multiple_of(t * Bp, 8)
        pre_t = pre_ref[pl.ds(row, Bp), :]                       # [x_t@Wih0^T+b0 | 0]
        # Layer 0 (zero-padded weights kill the h2 columns/rows):
        a1 = jnp.tanh(pre_t +
                      jnp.dot(h12, w0, preferred_element_type=jnp.float32))
        # a1 == [h1_t | 0]
        l1_in = jnp.where(lo_mask, a1, h12)                      # [h1_t | h2_{t-1}]
        # Layer 1: fused (was two dots) -> single MXU dot per step.
        a2 = jnp.tanh(jnp.dot(l1_in, w1, preferred_element_type=jnp.float32)
                      + b1)
        # a2 == [0 | h2_t]
        h12_new = a1 + a2                                        # [h1_t | h2_t]
        hs_ref[pl.ds(row, Bp), :] = h12_new
        return h12_new

    jax.lax.fori_loop(0, T, step, jnp.zeros((Bp, H2), jnp.float32),
                      unroll=True)

    # (2) Bulk FC over the whole sequence + single lane-batched writeback
    #     (wfc is zero-padded on the h1 rows, so only h2 contributes).
    out_ref[...] = (
        jnp.dot(hs_ref[...], wfc_ref[...], preferred_element_type=jnp.float32)
        + bfc_ref[...]).astype(out_ref.dtype)


def song_rnn_forward(x, params):
    """x: (B, T, I) float32, batch_first like PyTorch. Returns (B, T, O)."""
    (w_ih0, w_hh0, b_ih0, b_hh0,
     w_ih1, w_hh1, b_ih1, b_hh1,
     w_fc, b_fc) = params
    B, T, I = x.shape
    H = w_hh0.shape[0]
    O = w_fc.shape[0]
    H2 = 2 * H
    Bp = ((B + 7) // 8) * 8  # pad batch to a sublane multiple (free: vreg is 8x128)

    # Time-major, batch-padded, flattened to 2-D so the kernel only does
    # sublane-aligned 2-D slices (no risky in-kernel 3-D reshapes).
    x_tm = jnp.transpose(x.astype(jnp.float32), (1, 0, 2))      # (T, B, I)
    x_tm = jnp.pad(x_tm, ((0, 0), (0, Bp - B), (0, 0)))         # (T, Bp, I)
    x_flat = x_tm.reshape(T * Bp, I)

    z = lambda *s: jnp.zeros(s, jnp.float32)
    # Zero-padded / fused weights (built once, outside the kernel).
    wx0p = jnp.concatenate([w_ih0.T, z(I, H)], axis=1)                      # (I, 2H)
    b0p = jnp.concatenate([b_ih0 + b_hh0, z(H)])[None, :]                   # (1, 2H)
    w0p = jnp.concatenate(
        [jnp.concatenate([w_hh0.T, z(H, H)], axis=1), z(H, H2)], axis=0)    # (2H, 2H)
    w1p = jnp.concatenate(
        [jnp.concatenate([z(H, H), w_ih1.T], axis=1),
         jnp.concatenate([z(H, H), w_hh1.T], axis=1)], axis=0)              # (2H, 2H)
    b1p = jnp.concatenate([z(H), b_ih1 + b_hh1])[None, :]                   # (1, 2H)
    wfcp = jnp.concatenate([z(H, O), w_fc.T], axis=0)                       # (2H, O)
    bfc2 = b_fc[None, :]                                                    # (1, O)

    kernel = functools.partial(song_rnn_kernel, T=T, Bp=Bp, H=H)

    y_flat = pl.pallas_call(
        kernel,
        out_shape=jax.ShapeDtypeStruct((T * Bp, O), jnp.float32),
        in_specs=[pl.BlockSpec(memory_space=pltpu.MemorySpace.VMEM)] * 8,
        out_specs=pl.BlockSpec(memory_space=pltpu.MemorySpace.VMEM),
        scratch_shapes=[pltpu.VMEM((T * Bp, H2), jnp.float32),   # pre-activations
                        pltpu.VMEM((T * Bp, H2), jnp.float32)],  # hidden states
    )(x_flat, wx0p, b0p, w0p, w1p, b1p, wfcp, bfc2)

    y = y_flat.reshape(T, Bp, O)[:, :B, :]                       # drop batch padding
    return jnp.transpose(y, (1, 0, 2))                           # back to (B, T, O)


def init_params(key, input_dim=INPUT_DIM, hidden_dim=HIDDEN_DIM,
                output_dim=OUTPUT_DIM):
    """Deterministic init matching PyTorch shapes (uniform(-1/sqrt(H), 1/sqrt(H)))."""
    ks = jax.random.split(key, 10)
    bound = 1.0 / jnp.sqrt(hidden_dim)

    def u(k, shape):
        return jax.random.uniform(k, shape, jnp.float32, -bound, bound)

    w_ih0 = u(ks[0], (hidden_dim, input_dim))    # rnn.weight_ih_l0
    w_hh0 = u(ks[1], (hidden_dim, hidden_dim))   # rnn.weight_hh_l0
    b_ih0 = u(ks[2], (hidden_dim,))              # rnn.bias_ih_l0
    b_hh0 = u(ks[3], (hidden_dim,))              # rnn.bias_hh_l0
    w_ih1 = u(ks[4], (hidden_dim, hidden_dim))   # rnn.weight_ih_l1
    w_hh1 = u(ks[5], (hidden_dim, hidden_dim))   # rnn.weight_hh_l1
    b_ih1 = u(ks[6], (hidden_dim,))              # rnn.bias_ih_l1
    b_hh1 = u(ks[7], (hidden_dim,))              # rnn.bias_hh_l1
    w_fc = u(ks[8], (output_dim, hidden_dim))    # fc.weight
    b_fc = u(ks[9], (output_dim,))               # fc.bias
    return (w_ih0, w_hh0, b_ih0, b_hh0,
            w_ih1, w_hh1, b_ih1, b_hh1, w_fc, b_fc)


def reference_forward(x, params):
    """Pure-JAX reference (mirrors torch.nn.RNN + Linear) for correctness check."""
    (w_ih0, w_hh0, b_ih0, b_hh0,
     w_ih1, w_hh1, b_ih1, b_hh1, w_fc, b_fc) = params
    B, T, _ = x.shape
    H = w_hh0.shape[0]

    def step(carry, x_t):
        h1, h2 = carry
        h1n = jnp.tanh(x_t @ w_ih0.T + b_ih0 + h1 @ w_hh0.T + b_hh0)
        h2n = jnp.tanh(h1n @ w_ih1.T + b_ih1 + h2 @ w_hh1.T + b_hh1)
        return (h1n, h2n), h2n

    h0 = jnp.zeros((B, H), jnp.float32)
    _, outs = jax.lax.scan(step, (h0, h0), jnp.transpose(x, (1, 0, 2)))
    outs = jnp.transpose(outs, (1, 0, 2))  # (B, T, H)
    return outs @ w_fc.T + b_fc


if __name__ == "__main__":
    key = jax.random.PRNGKey(0)
    k_x, k_p = jax.random.split(key)

    B, T = 2, 8
    x = jax.random.normal(k_x, (B, T, INPUT_DIM), jnp.float32)
    params = init_params(k_p)

    out = song_rnn_forward(x, params)
    out = jax.block_until_ready(out)

    ref = reference_forward(x, params)
    assert out.shape == (B, T, OUTPUT_DIM)
    assert jnp.allclose(out, ref, atol=1e-5, rtol=1e-5), "mismatch vs reference"

    print("KERNEL_OK")
</pallas_src>

<mosaic_0001>
module attributes {stable_mosaic.version = 11 : i64} {
  func.func @song_rnn_kernel(%arg0: memref<64x6xf32, #tpu.memory_space<vmem>>, %arg1: memref<6x12xf32, #tpu.memory_space<vmem>>, %arg2: memref<1x12xf32, #tpu.memory_space<vmem>>, %arg3: memref<12x12xf32, #tpu.memory_space<vmem>>, %arg4: memref<12x12xf32, #tpu.memory_space<vmem>>, %arg5: memref<1x12xf32, #tpu.memory_space<vmem>>, %arg6: memref<12x6xf32, #tpu.memory_space<vmem>>, %arg7: memref<1x6xf32, #tpu.memory_space<vmem>>, %arg8: memref<64x6xf32, #tpu.memory_space<vmem>>, %arg9: memref<64x12xf32, #tpu.memory_space<vmem>>, %arg10: memref<64x12xf32, #tpu.memory_space<vmem>>) attributes {dimension_semantics = [], scalar_prefetch = 0 : i64, scratch_operands = 2 : i64, tpu.core_type = #tpu.core_type<tc>} {
    %c0 = arith.constant 0 : index
    %c0_0 = arith.constant 0 : index
    %0 = vector.load %arg0[%c0, %c0_0] : memref<64x6xf32, #tpu.memory_space<vmem>>, vector<64x6xf32>
    %c0_1 = arith.constant 0 : index
    %c0_2 = arith.constant 0 : index
    %1 = vector.load %arg1[%c0_1, %c0_2] : memref<6x12xf32, #tpu.memory_space<vmem>>, vector<6x12xf32>
    %cst = arith.constant dense<0.000000e+00> : vector<64x12xf32>
    %2 = tpu.matmul %0, %1, %cst {dimension_numbers = #tpu.dot_dimension_numbers<[1], [0], [0], [1], [0, 0, 1, 1], [], []>} : vector<64x6xf32>, vector<6x12xf32>, vector<64x12xf32> -> vector<64x12xf32>
    %c0_3 = arith.constant 0 : index
    %c0_4 = arith.constant 0 : index
    %3 = vector.load %arg2[%c0_3, %c0_4] : memref<1x12xf32, #tpu.memory_space<vmem>>, vector<1x12xf32>
    %4 = vector.broadcast %3 : vector<1x12xf32> to vector<64x12xf32>
    %5 = arith.addf %2, %4 : vector<64x12xf32>
    %c0_5 = arith.constant 0 : index
    %c0_6 = arith.constant 0 : index
    %6 = vector.load %arg9[%c0_5, %c0_6] : memref<64x12xf32, #tpu.memory_space<vmem>>, vector<64x12xf32>
    tpu.vector_store %arg9[%c0_5, %c0_6], %5 {strides = array<i32>} : memref<64x12xf32, #tpu.memory_space<vmem>>, vector<64x12xf32>,
    %c0_7 = arith.constant 0 : index
    %c0_8 = arith.constant 0 : index
    %7 = vector.load %arg3[%c0_7, %c0_8] : memref<12x12xf32, #tpu.memory_space<vmem>>, vector<12x12xf32>
    %c0_9 = arith.constant 0 : index
    %c0_10 = arith.constant 0 : index
    %8 = vector.load %arg4[%c0_9, %c0_10] : memref<12x12xf32, #tpu.memory_space<vmem>>, vector<12x12xf32>
    %c0_11 = arith.constant 0 : index
    %c0_12 = arith.constant 0 : index
    %9 = vector.load %arg5[%c0_11, %c0_12] : memref<1x12xf32, #tpu.memory_space<vmem>>, vector<1x12xf32>
    %10 = vector.shape_cast %9 : vector<1x12xf32> to vector<1x12xf32>
    %11 = vector.broadcast %10 : vector<1x12xf32> to vector<8x12xf32>
    %12 = tpu.iota {dimensions = array<i32: 1>} : vector<8x12xi32>
    %c6_i32 = arith.constant 6 : i32
    %13 = vector.broadcast %c6_i32 : i32 to vector<8x12xi32>
    %14 = arith.cmpi slt, %12, %13 : vector<8x12xi32>
    %cst_13 = arith.constant 0.000000e+00 : f32
    %15 = vector.broadcast %cst_13 : f32 to vector<8x12xf32>
    %c0_i32 = arith.constant 0 : i32
    %c8_i32 = arith.constant 8 : i32
    %16 = arith.muli %c0_i32, %c8_i32 : i32
    %17 = tpu.assume_multiple %16, 8 : i32
    %18 = arith.index_cast %17 : i32 to index
    %c0_14 = arith.constant 0 : index
    %19 = vector.load %arg9[%18, %c0_14] : memref<64x12xf32, #tpu.memory_space<vmem>>, vector<8x12xf32>
    %cst_15 = arith.constant dense<0.000000e+00> : vector<8x12xf32>
    %20 = tpu.matmul %15, %7, %cst_15 {dimension_numbers = #tpu.dot_dimension_numbers<[1], [0], [0], [1], [0, 0, 1, 1], [], []>} : vector<8x12xf32>, vector<12x12xf32>, vector<8x12xf32> -> vector<8x12xf32>
    %21 = arith.addf %19, %20 : vector<8x12xf32>
    %22 = math.tanh %21 : vector<8x12xf32>
    %23 = arith.select %14, %22, %15 : vector<8x12xi1>, vector<8x12xf32>
    %cst_16 = arith.constant dense<0.000000e+00> : vector<8x12xf32>
    %24 = tpu.matmul %23, %8, %cst_16 {dimension_numbers = #tpu.dot_dimension_numbers<[1], [0], [0], [1], [0, 0, 1, 1], [], []>} : vector<8x12xf32>, vector<12x12xf32>, vector<8x12xf32> -> vector<8x12xf32>
    %25 = arith.addf %24, %11 : vector<8x12xf32>
    %26 = math.tanh %25 : vector<8x12xf32>
    %27 = arith.addf %22, %26 : vector<8x12xf32>
    %28 = arith.index_cast %17 : i32 to index
    %c0_17 = arith.constant 0 : index
    %29 = vector.load %arg10[%28, %c0_17] : memref<64x12xf32, #tpu.memory_space<vmem>>, vector<8x12xf32>
    tpu.vector_store %arg10[%28, %c0_17], %27 {strides = array<i32>} : memref<64x12xf32, #tpu.memory_space<vmem>>, vector<8x12xf32>,
    %c1_i32 = arith.constant 1 : i32
    %c8_i32_18 = arith.constant 8 : i32
    %30 = arith.muli %c1_i32, %c8_i32_18 : i32
    %31 = tpu.assume_multiple %30, 8 : i32
    %32 = arith.index_cast %31 : i32 to index
    %c0_19 = arith.constant 0 : index
    %33 = vector.load %arg9[%32, %c0_19] : memref<64x12xf32, #tpu.memory_space<vmem>>, vector<8x12xf32>
    %cst_20 = arith.constant dense<0.000000e+00> : vector<8x12xf32>
    %34 = tpu.matmul %27, %7, %cst_20 {dimension_numbers = #tpu.dot_dimension_numbers<[1], [0], [0], [1], [0, 0, 1, 1], [], []>} : vector<8x12xf32>, vector<12x12xf32>, vector<8x12xf32> -> vector<8x12xf32>
    %35 = arith.addf %33, %34 : vector<8x12xf32>
    %36 = math.tanh %35 : vector<8x12xf32>
    %37 = arith.select %14, %36, %27 : vector<8x12xi1>, vector<8x12xf32>
    %cst_21 = arith.constant dense<0.000000e+00> : vector<8x12xf32>
    %38 = tpu.matmul %37, %8, %cst_21 {dimension_numbers = #tpu.dot_dimension_numbers<[1], [0], [0], [1], [0, 0, 1, 1], [], []>} : vector<8x12xf32>, vector<12x12xf32>, vector<8x12xf32> -> vector<8x12xf32>
    %39 = arith.addf %38, %11 : vector<8x12xf32>
    %40 = math.tanh %39 : vector<8x12xf32>
    %41 = arith.addf %36, %40 : vector<8x12xf32>
    %42 = arith.index_cast %31 : i32 to index
    %c0_22 = arith.constant 0 : index
    %43 = vector.load %arg10[%42, %c0_22] : memref<64x12xf32, #tpu.memory_space<vmem>>, vector<8x12xf32>
    tpu.vector_store %arg10[%42, %c0_22], %41 {strides = array<i32>} : memref<64x12xf32, #tpu.memory_space<vmem>>, vector<8x12xf32>,
    %c2_i32 = arith.constant 2 : i32
    %c8_i32_23 = arith.constant 8 : i32
    %44 = arith.muli %c2_i32, %c8_i32_23 : i32
    %45 = tpu.assume_multiple %44, 8 : i32
    %46 = arith.index_cast %45 : i32 to index
    %c0_24 = arith.constant 0 : index
    %47 = vector.load %arg9[%46, %c0_24] : memref<64x12xf32, #tpu.memory_space<vmem>>, vector<8x12xf32>
    %cst_25 = arith.constant dense<0.000000e+00> : vector<8x12xf32>
    %48 = tpu.matmul %41, %7, %cst_25 {dimension_numbers = #tpu.dot_dimension_numbers<[1], [0], [0], [1], [0, 0, 1, 1], [], []>} : vector<8x12xf32>, vector<12x12xf32>, vector<8x12xf32> -> vector<8x12xf32>
    %49 = arith.addf %47, %48 : vector<8x12xf32>
    %50 = math.tanh %49 : vector<8x12xf32>
    %51 = arith.select %14, %50, %41 : vector<8x12xi1>, vector<8x12xf32>
    %cst_26 = arith.constant dense<0.000000e+00> : vector<8x12xf32>
    %52 = tpu.matmul %51, %8, %cst_26 {dimension_numbers = #tpu.dot_dimension_numbers<[1], [0], [0], [1], [0, 0, 1, 1], [], []>} : vector<8x12xf32>, vector<12x12xf32>, vector<8x12xf32> -> vector<8x12xf32>
    %53 = arith.addf %52, %11 : vector<8x12xf32>
    %54 = math.tanh %53 : vector<8x12xf32>
    %55 = arith.addf %50, %54 : vector<8x12xf32>
    %56 = arith.index_cast %45 : i32 to index
    %c0_27 = arith.constant 0 : index
    %57 = vector.load %arg10[%56, %c0_27] : memref<64x12xf32, #tpu.memory_space<vmem>>, vector<8x12xf32>
    tpu.vector_store %arg10[%56, %c0_27], %55 {strides = array<i32>} : memref<64x12xf32, #tpu.memory_space<vmem>>, vector<8x12xf32>,
    %c3_i32 = arith.constant 3 : i32
    %c8_i32_28 = arith.constant 8 : i32
    %58 = arith.muli %c3_i32, %c8_i32_28 : i32
    %59 = tpu.assume_multiple %58, 8 : i32
    %60 = arith.index_cast %59 : i32 to index
    %c0_29 = arith.constant 0 : index
    %61 = vector.load %arg9[%60, %c0_29] : memref<64x12xf32, #tpu.memory_space<vmem>>, vector<8x12xf32>
    %cst_30 = arith.constant dense<0.000000e+00> : vector<8x12xf32>
    %62 = tpu.matmul %55, %7, %cst_30 {dimension_numbers = #tpu.dot_dimension_numbers<[1], [0], [0], [1], [0, 0, 1, 1], [], []>} : vector<8x12xf32>, vector<12x12xf32>, vector<8x12xf32> -> vector<8x12xf32>
    %63 = arith.addf %61, %62 : vector<8x12xf32>
    %64 = math.tanh %63 : vector<8x12xf32>
    %65 = arith.select %14, %64, %55 : vector<8x12xi1>, vector<8x12xf32>
    %cst_31 = arith.constant dense<0.000000e+00> : vector<8x12xf32>
    %66 = tpu.matmul %65, %8, %cst_31 {dimension_numbers = #tpu.dot_dimension_numbers<[1], [0], [0], [1], [0, 0, 1, 1], [], []>} : vector<8x12xf32>, vector<12x12xf32>, vector<8x12xf32> -> vector<8x12xf32>
    %67 = arith.addf %66, %11 : vector<8x12xf32>
    %68 = math.tanh %67 : vector<8x12xf32>
    %69 = arith.addf %64, %68 : vector<8x12xf32>
    %70 = arith.index_cast %59 : i32 to index
    %c0_32 = arith.constant 0 : index
    %71 = vector.load %arg10[%70, %c0_32] : memref<64x12xf32, #tpu.memory_space<vmem>>, vector<8x12xf32>
    tpu.vector_store %arg10[%70, %c0_32], %69 {strides = array<i32>} : memref<64x12xf32, #tpu.memory_space<vmem>>, vector<8x12xf32>,
    %c4_i32 = arith.constant 4 : i32
    %c8_i32_33 = arith.constant 8 : i32
    %72 = arith.muli %c4_i32, %c8_i32_33 : i32
    %73 = tpu.assume_multiple %72, 8 : i32
    %74 = arith.index_cast %73 : i32 to index
    %c0_34 = arith.constant 0 : index
    %75 = vector.load %arg9[%74, %c0_34] : memref<64x12xf32, #tpu.memory_space<vmem>>, vector<8x12xf32>
    %cst_35 = arith.constant dense<0.000000e+00> : vector<8x12xf32>
    %76 = tpu.matmul %69, %7, %cst_35 {dimension_numbers = #tpu.dot_dimension_numbers<[1], [0], [0], [1], [0, 0, 1, 1], [], []>} : vector<8x12xf32>, vector<12x12xf32>, vector<8x12xf32> -> vector<8x12xf32>
    %77 = arith.addf %75, %76 : vector<8x12xf32>
    %78 = math.tanh %77 : vector<8x12xf32>
    %79 = arith.select %14, %78, %69 : vector<8x12xi1>, vector<8x12xf32>
    %cst_36 = arith.constant dense<0.000000e+00> : vector<8x12xf32>
    %80 = tpu.matmul %79, %8, %cst_36 {dimension_numbers = #tpu.dot_dimension_numbers<[1], [0], [0], [1], [0, 0, 1, 1], [], []>} : vector<8x12xf32>, vector<12x12xf32>, vector<8x12xf32> -> vector<8x12xf32>
    %81 = arith.addf %80, %11 : vector<8x12xf32>
    %82 = math.tanh %81 : vector<8x12xf32>
    %83 = arith.addf %78, %82 : vector<8x12xf32>
    %84 = arith.index_cast %73 : i32 to index
    %c0_37 = arith.constant 0 : index
    %85 = vector.load %arg10[%84, %c0_37] : memref<64x12xf32, #tpu.memory_space<vmem>>, vector<8x12xf32>
    tpu.vector_store %arg10[%84, %c0_37], %83 {strides = array<i32>} : memref<64x12xf32, #tpu.memory_space<vmem>>, vector<8x12xf32>,
    %c5_i32 = arith.constant 5 : i32
    %c8_i32_38 = arith.constant 8 : i32
    %86 = arith.muli %c5_i32, %c8_i32_38 : i32
    %87 = tpu.assume_multiple %86, 8 : i32
    %88 = arith.index_cast %87 : i32 to index
    %c0_39 = arith.constant 0 : index
    %89 = vector.load %arg9[%88, %c0_39] : memref<64x12xf32, #tpu.memory_space<vmem>>, vector<8x12xf32>
    %cst_40 = arith.constant dense<0.000000e+00> : vector<8x12xf32>
    %90 = tpu.matmul %83, %7, %cst_40 {dimension_numbers = #tpu.dot_dimension_numbers<[1], [0], [0], [1], [0, 0, 1, 1], [], []>} : vector<8x12xf32>, vector<12x12xf32>, vector<8x12xf32> -> vector<8x12xf32>
    %91 = arith.addf %89, %90 : vector<8x12xf32>
    %92 = math.tanh %91 : vector<8x12xf32>
    %93 = arith.select %14, %92, %83 : vector<8x12xi1>, vector<8x12xf32>
    %cst_41 = arith.constant dense<0.000000e+00> : vector<8x12xf32>
    %94 = tpu.matmul %93, %8, %cst_41 {dimension_numbers = #tpu.dot_dimension_numbers<[1], [0], [0], [1], [0, 0, 1, 1], [], []>} : vector<8x12xf32>, vector<12x12xf32>, vector<8x12xf32> -> vector<8x12xf32>
    %95 = arith.addf %94, %11 : vector<8x12xf32>
    %96 = math.tanh %95 : vector<8x12xf32>
    %97 = arith.addf %92, %96 : vector<8x12xf32>
    %98 = arith.index_cast %87 : i32 to index
    %c0_42 = arith.constant 0 : index
    %99 = vector.load %arg10[%98, %c0_42] : memref<64x12xf32, #tpu.memory_space<vmem>>, vector<8x12xf32>
    tpu.vector_store %arg10[%98, %c0_42], %97 {strides = array<i32>} : memref<64x12xf32, #tpu.memory_space<vmem>>, vector<8x12xf32>,
    %c6_i32_43 = arith.constant 6 : i32
    %c8_i32_44 = arith.constant 8 : i32
    %100 = arith.muli %c6_i32_43, %c8_i32_44 : i32
    %101 = tpu.assume_multiple %100, 8 : i32
    %102 = arith.index_cast %101 : i32 to index
    %c0_45 = arith.constant 0 : index
    %103 = vector.load %arg9[%102, %c0_45] : memref<64x12xf32, #tpu.memory_space<vmem>>, vector<8x12xf32>
    %cst_46 = arith.constant dense<0.000000e+00> : vector<8x12xf32>
    %104 = tpu.matmul %97, %7, %cst_46 {dimension_numbers = #tpu.dot_dimension_numbers<[1], [0], [0], [1], [0, 0, 1, 1], [], []>} : vector<8x12xf32>, vector<12x12xf32>, vector<8x12xf32> -> vector<8x12xf32>
    %105 = arith.addf %103, %104 : vector<8x12xf32>
    %106 = math.tanh %105 : vector<8x12xf32>
    %107 = arith.select %14, %106, %97 : vector<8x12xi1>, vector<8x12xf32>
    %cst_47 = arith.constant dense<0.000000e+00> : vector<8x12xf32>
    %108 = tpu.matmul %107, %8, %cst_47 {dimension_numbers = #tpu.dot_dimension_numbers<[1], [0], [0], [1], [0, 0, 1, 1], [], []>} : vector<8x12xf32>, vector<12x12xf32>, vector<8x12xf32> -> vector<8x12xf32>
    %109 = arith.addf %108, %11 : vector<8x12xf32>
    %110 = math.tanh %109 : vector<8x12xf32>
    %111 = arith.addf %106, %110 : vector<8x12xf32>
    %112 = arith.index_cast %101 : i32 to index
    %c0_48 = arith.constant 0 : index
    %113 = vector.load %arg10[%112, %c0_48] : memref<64x12xf32, #tpu.memory_space<vmem>>, vector<8x12xf32>
    tpu.vector_store %arg10[%112, %c0_48], %111 {strides = array<i32>} : memref<64x12xf32, #tpu.memory_space<vmem>>, vector<8x12xf32>,
    %c7_i32 = arith.constant 7 : i32
    %c8_i32_49 = arith.constant 8 : i32
    %114 = arith.muli %c7_i32, %c8_i32_49 : i32
    %115 = tpu.assume_multiple %114, 8 : i32
    %116 = arith.index_cast %115 : i32 to index
    %c0_50 = arith.constant 0 : index
    %117 = vector.load %arg9[%116, %c0_50] : memref<64x12xf32, #tpu.memory_space<vmem>>, vector<8x12xf32>
    %cst_51 = arith.constant dense<0.000000e+00> : vector<8x12xf32>
    %118 = tpu.matmul %111, %7, %cst_51 {dimension_numbers = #tpu.dot_dimension_numbers<[1], [0], [0], [1], [0, 0, 1, 1], [], []>} : vector<8x12xf32>, vector<12x12xf32>, vector<8x12xf32> -> vector<8x12xf32>
    %119 = arith.addf %117, %118 : vector<8x12xf32>
    %120 = math.tanh %119 : vector<8x12xf32>
    %121 = arith.select %14, %120, %111 : vector<8x12xi1>, vector<8x12xf32>
    %cst_52 = arith.constant dense<0.000000e+00> : vector<8x12xf32>
    %122 = tpu.matmul %121, %8, %cst_52 {dimension_numbers = #tpu.dot_dimension_numbers<[1], [0], [0], [1], [0, 0, 1, 1], [], []>} : vector<8x12xf32>, vector<12x12xf32>, vector<8x12xf32> -> vector<8x12xf32>
    %123 = arith.addf %122, %11 : vector<8x12xf32>
    %124 = math.tanh %123 : vector<8x12xf32>
    %125 = arith.addf %120, %124 : vector<8x12xf32>
    %126 = arith.index_cast %115 : i32 to index
    %c0_53 = arith.constant 0 : index
    %127 = vector.load %arg10[%126, %c0_53] : memref<64x12xf32, #tpu.memory_space<vmem>>, vector<8x12xf32>
    tpu.vector_store %arg10[%126, %c0_53], %125 {strides = array<i32>} : memref<64x12xf32, #tpu.memory_space<vmem>>, vector<8x12xf32>,
    %c8_i32_54 = arith.constant 8 : i32
    %c0_55 = arith.constant 0 : index
    %c0_56 = arith.constant 0 : index
    %128 = vector.load %arg10[%c0_55, %c0_56] : memref<64x12xf32, #tpu.memory_space<vmem>>, vector<64x12xf32>
    %c0_57 = arith.constant 0 : index
    %c0_58 = arith.constant 0 : index
    %129 = vector.load %arg6[%c0_57, %c0_58] : memref<12x6xf32, #tpu.memory_space<vmem>>, vector<12x6xf32>
    %cst_59 = arith.constant dense<0.000000e+00> : vector<64x6xf32>
    %130 = tpu.matmul %128, %129, %cst_59 {dimension_numbers = #tpu.dot_dimension_numbers<[1], [0], [0], [1], [0, 0, 1, 1], [], []>} : vector<64x12xf32>, vector<12x6xf32>, vector<64x6xf32> -> vector<64x6xf32>
    %c0_60 = arith.constant 0 : index
    %c0_61 = arith.constant 0 : index
    %131 = vector.load %arg7[%c0_60, %c0_61] : memref<1x6xf32, #tpu.memory_space<vmem>>, vector<1x6xf32>
    %132 = vector.broadcast %131 : vector<1x6xf32> to vector<64x6xf32>
    %133 = arith.addf %130, %132 : vector<64x6xf32>
    %c0_62 = arith.constant 0 : index
    %c0_63 = arith.constant 0 : index
    %134 = vector.load %arg8[%c0_62, %c0_63] : memref<64x6xf32, #tpu.memory_space<vmem>>, vector<64x6xf32>
    tpu.vector_store %arg8[%c0_62, %c0_63], %133 {strides = array<i32>} : memref<64x6xf32, #tpu.memory_space<vmem>>, vector<64x6xf32>,
    return
  }
}

</mosaic_0001>

<bundles_post_ra>
// kernel: tpu_custom_call.1
= control target key start
LH: loop header
LB: loop body
LE: loop exit
PB: predicated region body
PF: predicated region fallthrough
CT: control target
= control target key end

     0   :  { %vm70_vm0 = vcmask 1045504   ;;  %vm45_vm1 = vcmask 48128   ;;  %vm206_vm2 = vcmask 1043456   ;;  %v1905_v7 = vmov 0.0   ;;  %s2247_s1 = inlined_call_operand.vmem [shape: f32[6,12], index: 1, kind: input, shape index: {}]   ;;  %s2248_s0 = inlined_call_operand.vmem [shape: f32[64,6], index: 0, kind: input, shape index: {}]   ;;  %s2249_s3 = inlined_call_operand.vmem [shape: f32[12,12], index: 3, kind: input, shape index: {}]   ;;  %s2250_s4 = inlined_call_operand.vmem [shape: f32[12,12], index: 4, kind: input, shape index: {}]   ;;  %s2251_s2 = inlined_call_operand.vmem [shape: f32[1,12], index: 2, kind: input, shape index: {}]   ;;  %s2252_s5 = inlined_call_operand.vmem [shape: f32[1,12], index: 5, kind: input, shape index: {}]   ;;  %s2253_s6 = inlined_call_operand.vmem [shape: f32[12,6], index: 6, kind: input, shape index: {}]   ;;  %s2254_s7 = inlined_call_operand.vmem [shape: f32[1,6], index: 7, kind: input, shape index: {}]   ;;  %s2255_s8 = inlined_call_operand.vmem [shape: f32[64,6], index: 8, kind: output, shape index: {}]  }
   0x1   :  { %v37_v0 = vld [vmem:[%s2247_s1] sm:$0x3f]  ;;  %v30_v2 = vld [vmem:[%s2248_s0 + $0x8] sm:$0xff]  ;;  %v35_v6 = vld [vmem:[%s2248_s0 + $0x30] sm:$0xff]  ;;  %vm1906_vm3 = vmmov 0   ;;  %vm179_vm4 = vcmask 97280   ;;  %v199_v29 = vlaneseq }
   0x2   :  { %v29_v1 = vld [vmem:[%s2248_s0] sm:$0xff]  ;;  %1727 = vmatprep.subr.msk.mxu0 %vm70_vm0, %v37_v0  ;;  %1869 = vmatprep.subr.msk.mxu1 %vm70_vm0, %v37_v0  ;;  %v34_v4 = vld [vmem:[%s2248_s0 + $0x28] sm:$0xff]  ;;  %v36_v9 = vld [vmem:[%s2248_s0 + $0x38] sm:$0xff] }
   0x3   :  { %1729 = vmatprep.mubr.msk.f32.mxu0 %vm45_vm1, %v29_v1  ;;  %v33_v3 = vld [vmem:[%s2248_s0 + $0x20] sm:$0xff]  ;;  %1728 = vmatpush3.msk.msra.mxu0 %vm70_vm0, %v37_v0  ;;  %v1972_v5 = vld [vmem:[%s2249_s3 + $0x8] sm:$0xf]  ;;  %v2038_v30 = vand.u32 127, %v199_v29  ;;  %v31_v45 = vld [vmem:[%s2248_s0 + $0x10] sm:$0xff] }
   0x4   :  { %1730 = vmatmul.mubr.msk.f32.vlgmr.msra.gmra.mxu0 %vm45_vm1, %v30_v2  ;;  %1870 = vmatpush3.msk.msra.mxu1 %vm70_vm0, %v37_v0  ;;  %v1983_v8 = vld [vmem:[%s2249_s3] sm:$0xff]  ;;  %v2009_v10 = vld [vmem:[%s2250_s4 + $0x8] sm:$0xf]  ;;  %v32_v46 = vld [vmem:[%s2248_s0 + $0x18] sm:$0xff] }
   0x5   :  { %1735 = vmatprep.mubr.msk.f32.mxu1 %vm45_vm1, %v33_v3  ;;  %1741 = vmatprep.subr.mxu1 %v1905_v7  ;;  %v2014_v11 = vld [vmem:[%s2250_s4] sm:$0xff]  ;;  %vm201_vm5 = vcmp.lt.s32.totalorder %v2038_v30, 6 }
   0x6   :  { %1736 = vmatmul.mubr.msk.f32.vlgmr.msra.gmra.mxu1 %vm45_vm1, %v34_v4  ;;  %1769 = vmatprep.subr.mxu0 %v1905_v7  ;;  %v2024_v12 = vld [vmem:[%s2251_s2] ss:$0 sm:$0xff] }
   0x7   :  { %1742 = vmatpush3.msk.msra.mxu1 %vm206_vm2, %v1972_v5  ;;  %1738 = vmatprep.mubr.msk.f32.mxu1 %vm45_vm1, %v35_v6  ;;  %v2054_v33 = vld [vmem:[%s2252_s5] ss:$0 sm:$0xff] }
   0x8   :  { %1743 = vmatprep.subr.mxu1 %v1905_v7  ;;  %1770 = vmatpush3.msk.msra.mxu0 %vm206_vm2, %v1972_v5 }
   0x9   :  { %1744 = vmatpush3.msra.mxu1 %v1983_v8  ;;  %1771 = vmatprep.subr.mxu0 %v1905_v7 }
   0xa   :  { %1739 = vmatmul.mubr.msk.f32.gmra.mxu1 %vm45_vm1, %v36_v9  ;;  %1748 = vmatprep.subr.mxu1 %v1905_v7 }
   0xb   :  { %1745 = vmatprep.mubr.msk.f32.mxu1 %vm1906_vm3, %v1905_v7  ;;  %1772 = vmatpush3.msra.mxu0 %v1983_v8 }
   0xc   :  { %1783 = vmatprep.subr.mxu0 %v1905_v7  ;;  %1732 = vmatprep.mubr.msk.f32.mxu0 %vm45_vm1, %v31_v45 }
   0xd   :  { %1733 = vmatmul.mubr.msk.f32.gmra.mxu0 %vm45_vm1, %v32_v46 }
   0xe   :  { %1746 = vmatmul.mubr.f32.vlgmr.msra.gmra.mxu1 %v1905_v7  ;;  %1773 = vmatprep.mubr.msk.f32.mxu0 %vm1906_vm3, %v1905_v7 }
   0xf   :  { %1752 = vmatprep.mubr.msk.f32.mxu1 %vm1906_vm3, %v1905_v7  ;;  %1749 = vmatpush3.msk.msra.mxu1 %vm206_vm2, %v2009_v10 }
  0x10   :  { %1750 = vmatprep.subr.mxu1 %v1905_v7 }
  0x11   :  { %1751 = vmatpush3.msra.mxu1 %v2014_v11 }
  0x12   :  { %1755 = vmatprep.subr.mxu1 %v1905_v7 }
  0xc4   :  { %v1731_v13 = vpop.f32.mrf.mxu0 }
  0xc5   :  { %v146_v14 = vadd.f32 %v1731_v13, %v2024_v12 }
  0xc6   :  { %v140_v15 = vpop.f32.mrf.mxu0  ;;  %v1737_v16 = vpop.f32.mrf.mxu1 }
  0xc7   :  { %181 = vst.msk [vmem:[#allocation2 + $0x8] sm:$0xff] %vm179_vm4, %v146_v14  ;;  %v141_v17 = vadd.f32 %v2024_v12, %v140_v15  ;;  %v166_v18 = vadd.f32 %v1737_v16, %v2024_v12 }
  0xc8   :  { %v160_v19 = vpop.f32.mrf.mxu1 }
  0xc9   :  { %180 = vst.msk [vmem:[#allocation2] sm:$0xff] %vm179_vm4, %v141_v17  ;;  %185 = vst.msk [vmem:[#allocation2 + $0x28] sm:$0xff] %vm179_vm4, %v166_v18  ;;  %v161_v20 = vadd.f32 %v2024_v12, %v160_v19 }
  0xca   :  { %v1740_v21 = vpop.f32.mrf.mxu1 }
  0xcb   :  { %184 = vst.msk [vmem:[#allocation2 + $0x20] sm:$0xff] %vm179_vm4, %v161_v20  ;;  %v176_v22 = vadd.f32 %v1740_v21, %v2024_v12 }
  0xcc   :  { %v170_v23 = vpop.f32.mrf.mxu1 }
  0xcd   :  { %187 = vst.msk [vmem:[#allocation2 + $0x38] sm:$0xff] %vm179_vm4, %v176_v22  ;;  %v171_v24 = vadd.f32 %v2024_v12, %v170_v23  ;;  %v1734_v52 = vpop.f32.mrf.mxu0 }
  0xce   :  { %v276_v25 = vpop.f32.mrf.mxu1  ;;  %v363_v39 = vld [vmem:[#allocation2 + $0x8] sm:$0xff]  ;;  %v156_v53 = vadd.f32 %v1734_v52, %v2024_v12  ;;  %v1455_v52 = vld [vmem:[%s2253_s6] sm:$0xff] }
  0xcf   :  { %186 = vst.msk [vmem:[#allocation2 + $0x30] sm:$0xff] %vm179_vm4, %v171_v24  ;;  %v150_v54 = vpop.f32.mrf.mxu0 }
  0xd0   :  { %v202_v26 = vld [vmem:[#allocation2] sm:$0xff]  ;;  %v1747_v27 = vpop.f32.mrf.mxu1  ;;  %183 = vst.msk [vmem:[#allocation2 + $0x18] sm:$0xff] %vm179_vm4, %v156_v53  ;;  %v151_v55 = vadd.f32 %v2024_v12, %v150_v54 }
  0xd1   :  { %v280_v28 = vadd.f32 %v276_v25, %v202_v26 }
  0xd2   :  { %182 = vst.msk [vmem:[#allocation2 + $0x10] sm:$0xff] %vm179_vm4, %v151_v55  ;;  %v828_v19 = vld [vmem:[#allocation2 + $0x20] sm:$0xff] }
  0xd3   :  { %1873 = vtanh.f32 %v280_v28 }
  0xd7   :  { %v673_v3 = vld [vmem:[#allocation2 + $0x18] sm:$0xff] }
  0xd9   :  { %v518_v56 = vld [vmem:[#allocation2 + $0x10] sm:$0xff] }
  0xe0   :  { %v1874_v31 = vpop.eup %1873 }
  0xe1   :  { %v282_v32 = vsel %vm201_vm5, %v1874_v31, 0.0 }
  0xe2   :  { %1753 = vmatmul.mubr.msk.f32.vlgmr.msra.gmra.mxu1 %vm179_vm4, %v282_v32 }
  0xe3   :  { %1756 = vmatpush3.msk.msra.mxu1 %vm206_vm2, %v1972_v5  ;;  %1759 = vmatprep.mubr.msk.f32.mxu1 %vm1906_vm3, %v1905_v7 }
  0xe4   :  { %1757 = vmatprep.subr.mxu1 %v1905_v7 }
  0xe5   :  { %1758 = vmatpush3.msra.mxu1 %v1983_v8 }
  0xe6   :  { %1762 = vmatprep.subr.mxu1 %v1905_v7 }
 0x1a2   :  { %v355_v34 = vpop.f32.mrf.mxu1 }
 0x1a3   :  { %v356_v35 = vadd.f32 %v2054_v33, %v355_v34 }
 0x1a4   :  { %v1754_v36 = vpop.f32.mrf.mxu1 }
 0x1a5   :  { %1875 = vtanh.f32 %v356_v35 }
 0x1b2   :  { %v1876_v37 = vpop.eup %1875 }
 0x1b3   :  { %v360_v38 = vadd.f32 %v1876_v37, %v1874_v31  ;;  %v983_v31 = vld [vmem:[#allocation2 + $0x28] sm:$0xff] }
 0x1b5   :  { %361 = vst.msk [vmem:[#allocation3] sm:$0xff] %vm179_vm4, %v360_v38  ;;  %1760 = vmatmul.mubr.msk.f32.vlgmr.msra.gmra.mxu1 %vm179_vm4, %v360_v38 }
 0x1b6   :  { %1763 = vmatpush3.msk.msra.mxu1 %vm206_vm2, %v2009_v10  ;;  %1766 = vmatprep.mubr.msk.f32.mxu1 %vm1906_vm3, %v1905_v7 }
 0x1b7   :  { %1764 = vmatprep.subr.mxu1 %v1905_v7 }
 0x1b8   :  { %1765 = vmatpush3.msra.mxu1 %v2014_v11 }
 0x1b9   :  { %1776 = vmatprep.subr.mxu1 %v1905_v7 }
 0x275   :  { %v433_v40 = vpop.f32.mrf.mxu1 }
 0x276   :  { %v437_v41 = vadd.f32 %v433_v40, %v363_v39 }
 0x277   :  { %v1761_v42 = vpop.f32.mrf.mxu1 }
 0x278   :  { %1877 = vtanh.f32 %v437_v41 }
 0x285   :  { %v1878_v43 = vpop.eup %1877 }
 0x286   :  { %v439_v44 = vsel %vm201_vm5, %v1878_v43, %v360_v38 }
 0x287   :  { %1767 = vmatmul.mubr.msk.f32.vlgmr.msra.gmra.mxu1 %vm179_vm4, %v439_v44 }
 0x288   :  { %1777 = vmatpush3.msk.msra.mxu1 %vm206_vm2, %v2009_v10  ;;  %1780 = vmatprep.mubr.msk.f32.mxu1 %vm1906_vm3, %v1905_v7 }
 0x289   :  { %1778 = vmatprep.subr.mxu1 %v1905_v7 }
 0x28a   :  { %1779 = vmatpush3.msra.mxu1 %v2014_v11 }
 0x28b   :  { %1790 = vmatprep.subr.mxu1 %v1905_v7 }
 0x347   :  { %v509_v47 = vpop.f32.mrf.mxu1 }
 0x348   :  { %v510_v48 = vadd.f32 %v2054_v33, %v509_v47 }
 0x349   :  { %v1768_v49 = vpop.f32.mrf.mxu1 }
 0x34a   :  { %1879 = vtanh.f32 %v510_v48 }
 0x357   :  { %v1880_v50 = vpop.eup %1879 }
 0x358   :  { %v514_v51 = vadd.f32 %v1880_v50, %v1878_v43  ;;  %v1138_v43 = vld [vmem:[#allocation2 + $0x30] sm:$0xff] }
 0x35a   :  { %516 = vst.msk [vmem:[#allocation3 + $0x8] sm:$0xff] %vm179_vm4, %v514_v51  ;;  %1774 = vmatmul.mubr.msk.f32.vlgmr.msra.gmra.mxu0 %vm179_vm4, %v514_v51 }
 0x35b   :  { %1784 = vmatpush3.msk.msra.mxu0 %vm206_vm2, %v1972_v5  ;;  %1787 = vmatprep.mubr.msk.f32.mxu0 %vm1906_vm3, %v1905_v7 }
 0x35c   :  { %1785 = vmatprep.subr.mxu0 %v1905_v7 }
 0x35d   :  { %1786 = vmatpush3.msra.mxu0 %v1983_v8 }
 0x35e   :  { %1797 = vmatprep.subr.mxu0 %v1905_v7 }
 0x41a   :  { %v588_v57 = vpop.f32.mrf.mxu0 }
 0x41b   :  { %v592_v58 = vadd.f32 %v588_v57, %v518_v56 }
 0x41c   :  { %v1775_v59 = vpop.f32.mrf.mxu0 }
 0x41d   :  { %1881 = vtanh.f32 %v592_v58  ;;  %v1293_v58 = vld [vmem:[#allocation2 + $0x38] sm:$0xff] }
 0x42a   :  { %v1882_v60 = vpop.eup %1881 }
 0x42b   :  { %v594_v61 = vsel %vm201_vm5, %v1882_v60, %v514_v51 }
 0x42c   :  { %1781 = vmatmul.mubr.msk.f32.vlgmr.msra.gmra.mxu1 %vm179_vm4, %v594_v61 }
 0x42d   :  { %1791 = vmatpush3.msk.msra.mxu1 %vm206_vm2, %v2009_v10  ;;  %1794 = vmatprep.mubr.msk.f32.mxu1 %vm1906_vm3, %v1905_v7 }
 0x42e   :  { %1792 = vmatprep.subr.mxu1 %v1905_v7 }
 0x42f   :  { %1793 = vmatpush3.msra.mxu1 %v2014_v11 }
 0x430   :  { %1804 = vmatprep.subr.mxu1 %v1905_v7 }
 0x4ec   :  { %v664_v62 = vpop.f32.mrf.mxu1 }
 0x4ed   :  { %v665_v63 = vadd.f32 %v2054_v33, %v664_v62  ;;  %v1650_v62 = vld [vmem:[%s2254_s7] ss:$0 sm:$0xff] }
 0x4ee   :  { %v1782_v0 = vpop.f32.mrf.mxu1 }
 0x4ef   :  { %1883 = vtanh.f32 %v665_v63 }
 0x4fc   :  { %v1884_v1 = vpop.eup %1883 }
 0x4fd   :  { %v669_v2 = vadd.f32 %v1884_v1, %v1882_v60 }
 0x4ff   :  { %671 = vst.msk [vmem:[#allocation3 + $0x10] sm:$0xff] %vm179_vm4, %v669_v2  ;;  %1788 = vmatmul.mubr.msk.f32.vlgmr.msra.gmra.mxu0 %vm179_vm4, %v669_v2 }
 0x500   :  { %1798 = vmatpush3.msk.msra.mxu0 %vm206_vm2, %v1972_v5  ;;  %1801 = vmatprep.mubr.msk.f32.mxu0 %vm1906_vm3, %v1905_v7 }
 0x501   :  { %1799 = vmatprep.subr.mxu0 %v1905_v7 }
 0x502   :  { %1800 = vmatpush3.msra.mxu0 %v1983_v8 }
 0x503   :  { %1811 = vmatprep.subr.mxu0 %v1905_v7 }
 0x506   :  { %v1449_v53 = vld [vmem:[#allocation3 + $0x10] sm:$0xff] }
 0x5bf   :  { %v743_v4 = vpop.f32.mrf.mxu0 }
 0x5c0   :  { %v747_v6 = vadd.f32 %v743_v4, %v673_v3 }
 0x5c1   :  { %v1789_v9 = vpop.f32.mrf.mxu0 }
 0x5c2   :  { %1885 = vtanh.f32 %v747_v6 }
 0x5cf   :  { %v1886_v12 = vpop.eup %1885 }
 0x5d0   :  { %v749_v13 = vsel %vm201_vm5, %v1886_v12, %v669_v2 }
 0x5d1   :  { %1795 = vmatmul.mubr.msk.f32.vlgmr.msra.gmra.mxu1 %vm179_vm4, %v749_v13 }
 0x5d2   :  { %1805 = vmatpush3.msk.msra.mxu1 %vm206_vm2, %v2009_v10  ;;  %1808 = vmatprep.mubr.msk.f32.mxu1 %vm1906_vm3, %v1905_v7 }
 0x5d3   :  { %1806 = vmatprep.subr.mxu1 %v1905_v7 }
 0x5d4   :  { %1807 = vmatpush3.msra.mxu1 %v2014_v11 }
 0x5d5   :  { %1818 = vmatprep.subr.mxu1 %v1905_v7 }
 0x691   :  { %v819_v14 = vpop.f32.mrf.mxu1 }
 0x692   :  { %v820_v15 = vadd.f32 %v2054_v33, %v819_v14 }
 0x693   :  { %v1796_v16 = vpop.f32.mrf.mxu1 }
 0x694   :  { %1887 = vtanh.f32 %v820_v15 }
 0x6a1   :  { %v1888_v17 = vpop.eup %1887 }
 0x6a2   :  { %v824_v18 = vadd.f32 %v1888_v17, %v1886_v12 }
 0x6a4   :  { %826 = vst.msk [vmem:[#allocation3 + $0x18] sm:$0xff] %vm179_vm4, %v824_v18  ;;  %1802 = vmatmul.mubr.msk.f32.vlgmr.msra.gmra.mxu0 %vm179_vm4, %v824_v18 }
 0x6a5   :  { %1812 = vmatpush3.msk.msra.mxu0 %vm206_vm2, %v1972_v5  ;;  %1815 = vmatprep.mubr.msk.f32.mxu0 %vm1906_vm3, %v1905_v7 }
 0x6a6   :  { %1813 = vmatprep.subr.mxu0 %v1905_v7 }
 0x6a7   :  { %1814 = vmatpush3.msra.mxu0 %v1983_v8 }
 0x6a8   :  { %1825 = vmatprep.subr.mxu0 %v1905_v7 }
 0x6ab   :  { %v1450_v54 = vld [vmem:[#allocation3 + $0x18] sm:$0xff] }
 0x764   :  { %v898_v20 = vpop.f32.mrf.mxu0 }
 0x765   :  { %v902_v21 = vadd.f32 %v898_v20, %v828_v19 }
 0x766   :  { %v1803_v22 = vpop.f32.mrf.mxu0 }
 0x767   :  { %1889 = vtanh.f32 %v902_v21 }
 0x774   :  { %v1890_v23 = vpop.eup %1889 }
 0x775   :  { %v904_v24 = vsel %vm201_vm5, %v1890_v23, %v824_v18 }
 0x776   :  { %1809 = vmatmul.mubr.msk.f32.vlgmr.msra.gmra.mxu1 %vm179_vm4, %v904_v24 }
 0x777   :  { %1819 = vmatpush3.msk.msra.mxu1 %vm206_vm2, %v2009_v10  ;;  %1822 = vmatprep.mubr.msk.f32.mxu1 %vm1906_vm3, %v1905_v7 }
 0x778   :  { %1820 = vmatprep.subr.mxu1 %v1905_v7 }
 0x779   :  { %1821 = vmatpush3.msra.mxu1 %v2014_v11 }
 0x77a   :  { %1832 = vmatprep.subr.mxu1 %v1905_v7 }
 0x836   :  { %v974_v25 = vpop.f32.mrf.mxu1 }
 0x837   :  { %v975_v26 = vadd.f32 %v2054_v33, %v974_v25 }
 0x838   :  { %v1810_v27 = vpop.f32.mrf.mxu1 }
 0x839   :  { %1891 = vtanh.f32 %v975_v26 }
 0x846   :  { %v1892_v28 = vpop.eup %1891 }
 0x847   :  { %v979_v29 = vadd.f32 %v1892_v28, %v1890_v23 }
 0x849   :  { %981 = vst.msk [vmem:[#allocation3 + $0x20] sm:$0xff] %vm179_vm4, %v979_v29  ;;  %1816 = vmatmul.mubr.msk.f32.vlgmr.msra.gmra.mxu0 %vm179_vm4, %v979_v29 }
 0x84a   :  { %1826 = vmatpush3.msk.msra.mxu0 %vm206_vm2, %v1972_v5  ;;  %1829 = vmatprep.mubr.msk.f32.mxu0 %vm1906_vm3, %v1905_v7 }
 0x84b   :  { %1827 = vmatprep.subr.mxu0 %v1905_v7 }
 0x84c   :  { %1828 = vmatpush3.msra.mxu0 %v1983_v8 }
 0x84d   :  { %1839 = vmatprep.subr.mxu0 %v1905_v7 }
 0x850   :  { %v1451_v55 = vld [vmem:[#allocation3 + $0x20] sm:$0xff] }
 0x909   :  { %v1053_v32 = vpop.f32.mrf.mxu0 }
 0x90a   :  { %v1057_v34 = vadd.f32 %v1053_v32, %v983_v31 }
 0x90b   :  { %v1817_v35 = vpop.f32.mrf.mxu0 }
 0x90c   :  { %1893 = vtanh.f32 %v1057_v34 }
 0x919   :  { %v1894_v36 = vpop.eup %1893 }
 0x91a   :  { %v1059_v37 = vsel %vm201_vm5, %v1894_v36, %v979_v29 }
 0x91b   :  { %1823 = vmatmul.mubr.msk.f32.vlgmr.msra.gmra.mxu1 %vm179_vm4, %v1059_v37 }
 0x91c   :  { %1833 = vmatpush3.msk.msra.mxu1 %vm206_vm2, %v2009_v10  ;;  %1836 = vmatprep.mubr.msk.f32.mxu1 %vm1906_vm3, %v1905_v7 }
 0x91d   :  { %1834 = vmatprep.subr.mxu1 %v1905_v7 }
 0x91e   :  { %1835 = vmatpush3.msra.mxu1 %v2014_v11 }
 0x91f   :  { %1846 = vmatprep.subr.mxu1 %v1905_v7 }
 0x9db   :  { %v1129_v38 = vpop.f32.mrf.mxu1 }
 0x9dc   :  { %v1130_v39 = vadd.f32 %v2054_v33, %v1129_v38 }
 0x9dd   :  { %v1824_v40 = vpop.f32.mrf.mxu1 }
 0x9de   :  { %1895 = vtanh.f32 %v1130_v39 }
 0x9eb   :  { %v1896_v41 = vpop.eup %1895 }
 0x9ec   :  { %v1134_v42 = vadd.f32 %v1896_v41, %v1894_v36 }
 0x9ee   :  { %1136 = vst.msk [vmem:[#allocation3 + $0x28] sm:$0xff] %vm179_vm4, %v1134_v42  ;;  %1830 = vmatmul.mubr.msk.f32.vlgmr.msra.gmra.mxu0 %vm179_vm4, %v1134_v42 }
 0x9ef   :  { %1840 = vmatpush3.msk.msra.mxu0 %vm206_vm2, %v1972_v5  ;;  %1843 = vmatprep.mubr.msk.f32.mxu0 %vm1906_vm3, %v1905_v7  ;;  %v1456_v5 = vld [vmem:[%s2253_s6 + $0x8] sm:$0xf] }
 0x9f0   :  { %1841 = vmatprep.subr.mxu0 %v1905_v7 }
 0x9f1   :  { %1842 = vmatpush3.msra.mxu0 %v1983_v8 }
 0x9f2   :  { %1853 = vmatprep.subr.msk.mxu0 %vm206_vm2, %v1456_v5 }
 0x9f5   :  { %v1452_v56 = vld [vmem:[#allocation3 + $0x28] sm:$0xff] }
 0xaae   :  { %v1208_v44 = vpop.f32.mrf.mxu0 }
 0xaaf   :  { %v1212_v45 = vadd.f32 %v1208_v44, %v1138_v43 }
 0xab0   :  { %v1831_v46 = vpop.f32.mrf.mxu0 }
 0xab1   :  { %1897 = vtanh.f32 %v1212_v45 }
 0xabe   :  { %v1898_v47 = vpop.eup %1897 }
 0xabf   :  { %v1214_v48 = vsel %vm201_vm5, %v1898_v47, %v1134_v42 }
 0xac0   :  { %1837 = vmatmul.mubr.msk.f32.vlgmr.msra.gmra.mxu1 %vm179_vm4, %v1214_v48 }
 0xac1   :  { %1847 = vmatpush3.msk.msra.mxu1 %vm206_vm2, %v2009_v10  ;;  %1850 = vmatprep.mubr.msk.f32.mxu1 %vm1906_vm3, %v1905_v7 }
 0xac2   :  { %1848 = vmatprep.subr.mxu1 %v1905_v7  ;;  %v1447_v7 = vld [vmem:[#allocation3] sm:$0xff] }
 0xac3   :  { %1849 = vmatpush3.msra.mxu1 %v2014_v11  ;;  %v1448_v11 = vld [vmem:[#allocation3 + $0x8] sm:$0xff] }
 0xb80   :  { %v1284_v8 = vpop.f32.mrf.mxu1 }
 0xb81   :  { %v1285_v49 = vadd.f32 %v2054_v33, %v1284_v8 }
 0xb82   :  { %v1838_v50 = vpop.f32.mrf.mxu1 }
 0xb83   :  { %1899 = vtanh.f32 %v1285_v49 }
 0xb90   :  { %v1900_v51 = vpop.eup %1899 }
 0xb91   :  { %v1289_v10 = vadd.f32 %v1900_v51, %v1898_v47 }
 0xb93   :  { %1291 = vst.msk [vmem:[#allocation3 + $0x30] sm:$0xff] %vm179_vm4, %v1289_v10  ;;  %1844 = vmatmul.mubr.msk.f32.vlgmr.msra.gmra.mxu0 %vm179_vm4, %v1289_v10 }
 0xb94   :  { %1854 = vmatpush3.msk.msra.mxu0 %vm206_vm2, %v1456_v5  ;;  %1857 = vmatprep.mubr.msk.f32.mxu0 %vm179_vm4, %v1447_v7 }
 0xb95   :  { %1855 = vmatprep.subr.mxu0 %v1455_v52 }
 0xb96   :  { %1856 = vmatpush3.msra.mxu0 %v1455_v52 }
 0xb97   :  { %1858 = vmatmul.mubr.msk.f32.vlgmr.msra.gmra.mxu0 %vm179_vm4, %v1448_v11 }
 0xb98   :  { %1860 = vmatprep.mubr.msk.f32.mxu0 %vm179_vm4, %v1449_v53 }
 0xb9a   :  { %v1453_v57 = vld [vmem:[#allocation3 + $0x30] sm:$0xff] }
 0xb9b   :  { %1861 = vmatmul.mubr.msk.f32.gmra.mxu0 %vm179_vm4, %v1450_v54 }
 0xb9c   :  { %1863 = vmatprep.mubr.msk.f32.mxu0 %vm179_vm4, %v1451_v55 }
 0xb9f   :  { %1864 = vmatmul.mubr.msk.f32.gmra.mxu0 %vm179_vm4, %v1452_v56 }
 0xba0   :  { %1866 = vmatprep.mubr.msk.f32.mxu0 %vm179_vm4, %v1453_v57 }
 0xc53   :  { %v1363_v59 = vpop.f32.mrf.mxu0 }
 0xc54   :  { %v1367_v60 = vadd.f32 %v1363_v59, %v1293_v58 }
 0xc55   :  { %v1845_v61 = vpop.f32.mrf.mxu0 }
 0xc56   :  { %1901 = vtanh.f32 %v1367_v60 }
 0xc57   :  { %v1859_v63 = vpop.f32.mrf.mxu0 }
 0xc58   :  { %v1563_v0 = vadd.f32 %v1859_v63, %v1650_v62 }
 0xc59   :  { %v1557_v1 = vpop.f32.mrf.mxu0 }
 0xc5a   :  { %1597 = vst.msk [vmem:[%s2255_s8 + $0x8] sm:$0xff] %vm45_vm1, %v1563_v0  ;;  %v1558_v2 = vadd.f32 %v1650_v62, %v1557_v1 }
 0xc5b   :  { %v1862_v3 = vpop.f32.mrf.mxu0 }
 0xc5c   :  { %1596 = vst.msk [vmem:[%s2255_s8] sm:$0xff] %vm45_vm1, %v1558_v2  ;;  %v1573_v4 = vadd.f32 %v1862_v3, %v1650_v62 }
 0xc5d   :  { %v1567_v6 = vpop.f32.mrf.mxu0 }
 0xc5e   :  { %1599 = vst.msk [vmem:[%s2255_s8 + $0x18] sm:$0xff] %vm45_vm1, %v1573_v4  ;;  %v1568_v9 = vadd.f32 %v1650_v62, %v1567_v6 }
 0xc5f   :  { %v1865_v12 = vpop.f32.mrf.mxu0 }
 0xc60   :  { %1598 = vst.msk [vmem:[%s2255_s8 + $0x10] sm:$0xff] %vm45_vm1, %v1568_v9  ;;  %v1583_v13 = vadd.f32 %v1865_v12, %v1650_v62 }
 0xc61   :  { %v1577_v14 = vpop.f32.mrf.mxu0 }
 0xc62   :  { %1601 = vst.msk [vmem:[%s2255_s8 + $0x28] sm:$0xff] %vm45_vm1, %v1583_v13  ;;  %v1578_v15 = vadd.f32 %v1650_v62, %v1577_v14 }
 0xc63   :  { %v1902_v16 = vpop.eup %1901 }
 0xc64   :  { %1600 = vst.msk [vmem:[%s2255_s8 + $0x20] sm:$0xff] %vm45_vm1, %v1578_v15  ;;  %v1369_v17 = vsel %vm201_vm5, %v1902_v16, %v1289_v10 }
 0xc65   :  { %1851 = vmatmul.mubr.msk.f32.vlgmr.msra.gmra.mxu1 %vm179_vm4, %v1369_v17 }
 0xd25   :  { %v1439_v18 = vpop.f32.mrf.mxu1 }
 0xd26   :  { %v1440_v19 = vadd.f32 %v2054_v33, %v1439_v18 }
 0xd27   :  { %v1852_v20 = vpop.f32.mrf.mxu1 }
 0xd28   :  { %1903 = vtanh.f32 %v1440_v19 }
 0xd35   :  { %v1904_v21 = vpop.eup %1903 }
 0xd36   :  { %v1444_v22 = vadd.f32 %v1904_v21, %v1902_v16 }
 0xd38   :  { %1446 = vst.msk [vmem:[#allocation3 + $0x38] sm:$0xff] %vm179_vm4, %v1444_v22 }
 0xd3f   :  { %v1454_v23 = vld [vmem:[#allocation3 + $0x38] sm:$0xff] }
 0xd40   :  { %1867 = vmatmul.mubr.msk.f32.gmra.mxu0 %vm179_vm4, %v1454_v23 }
 0xe00   :  { %v1868_v24 = vpop.f32.mrf.mxu0 }
 0xe01   :  { %v1593_v25 = vadd.f32 %v1868_v24, %v1650_v62 }
 0xe02   :  { %v1587_v26 = vpop.f32.mrf.mxu0 }
 0xe03   :  { %1603 = vst.msk [vmem:[%s2255_s8 + $0x38] sm:$0xff] %vm45_vm1, %v1593_v25  ;;  %v1588_v30 = vadd.f32 %v1650_v62, %v1587_v26 }
 0xe05   :  { %1602 = vst.msk [vmem:[%s2255_s8 + $0x30] sm:$0xff] %vm45_vm1, %v1588_v30 }

</bundles_post_ra>
